<compile_context>
chip_gen: v5e
topology: v5e:2x2
jax: 0.10.0
libtpu: 0.0.40
codegen_flags: <defaults>
</compile_context>

<pallas_src>
import math

import jax
import jax.numpy as jnp
import numpy as np
from jax import lax
from jax.experimental import pallas as pl
from jax.experimental.pallas import tpu as pltpu

# Large-but-finite additive mask bias.  Logits/mask math stays in f32 inside
# the kernel (bf16 shares the f32 exponent range, so this is bf16-safe too).
_MASK_VALUE = -0.7 * float(np.finfo(np.float32).max)

_VMEM_LIMIT = 48 * 1024 * 1024  # > v5e/v6e default scoped VMEM, < v7x physical


def _round_up(x, m):
    return ((x + m - 1) // m) * m


def _choose_tile(dim, preferred, align):
    """Aligned tile <= preferred.  Prefers an exact divisor of `dim`; if none
    exists the caller pads `dim` up to a multiple of the returned tile."""
    if dim <= preferred:
        return _round_up(dim, align)
    t = (preferred // align) * align
    best = t
    while t >= align:
        if dim % t == 0:
            return t
        t -= align
    return best  # no aligned divisor: caller pads dim to a multiple of this


def _pad2(a, rows, cols, value=0.0):
    r, c = a.shape
    if r == rows and c == cols:
        return a
    return jnp.pad(a, ((0, rows - r), (0, cols - c)), constant_values=value)


# ----------------------------------------------------------------------------
# Kernel 1: tiled multi-output linear projection  y_t = x @ w_t + b_t
#   (n_out = 1 for a plain projection; 2/3 when K/V or Q/K/V share the input,
#    so the activation tile is read from HBM once for all fused outputs and no
#    wrapper-side slicing of a wide result is needed.)
# ----------------------------------------------------------------------------
def _make_linear_kernel(n_out):
    def kernel(*refs):
        # refs: x, w_0..w_{n-1}, b_0..b_{n-1}, o_0..o_{n-1}, acc_0..acc_{n-1}
        x_ref = refs[0]
        w_refs = refs[1:1 + n_out]
        b_refs = refs[1 + n_out:1 + 2 * n_out]
        o_refs = refs[1 + 2 * n_out:1 + 3 * n_out]
        acc_refs = refs[1 + 3 * n_out:1 + 4 * n_out]

        k = pl.program_id(2)
        last_k = pl.num_programs(2) - 1

        # bf16 MXU operands, f32 accumulation.
        x = x_ref[...].astype(jnp.bfloat16)

        for t in range(n_out):
            @pl.when(k == 0)
            def _init(acc=acc_refs[t], b=b_refs[t]):
                # Fold the bias add into the accumulator init.
                acc[...] = jnp.broadcast_to(b[...].astype(jnp.float32),
                                            acc.shape)

            acc_refs[t][...] += jnp.dot(
                x, w_refs[t][...].astype(jnp.bfloat16),
                preferred_element_type=jnp.float32)

            @pl.when(k == last_k)
            def _fin(o=o_refs[t], acc=acc_refs[t]):
                o[...] = acc[...].astype(o.dtype)

    return kernel


def pallas_linear_fused(x, weights, biases, *, tm=512, tn=256, tk=512):
    """y_t = x @ w_t + b_t.  x:(M, K); w_t:(K, N) (already transposed from the
    PyTorch (N, K) layout once in the wrapper); b_t:(N,).  Returns a tuple."""
    n_out = len(weights)
    M, K = x.shape
    N = weights[0].shape[1]

    tm = _choose_tile(M, tm, 8)      # sublane-dim tile (big -> fewer w refetch)
    tn = _choose_tile(N, tn, 128)    # lane-dim tile (lane-dense stores)
    tk = _choose_tile(K, tk, 128)
    Mp, Np, Kp = _round_up(M, tm), _round_up(N, tn), _round_up(K, tk)

    xp = _pad2(x, Mp, Kp)
    wps = [_pad2(w, Kp, Np) for w in weights]
    bps = [_pad2(b.reshape(1, N), 1, Np) for b in biases]

    grid = (Mp // tm, Np // tn, Kp // tk)
    in_specs = [pl.BlockSpec((tm, tk), lambda i, j, k: (i, k))]
    in_specs += [pl.BlockSpec((tk, tn), lambda i, j, k: (k, j))
                 for _ in range(n_out)]
    in_specs += [pl.BlockSpec((1, tn), lambda i, j, k: (0, j))
                 for _ in range(n_out)]
    out_specs = tuple(pl.BlockSpec((tm, tn), lambda i, j, k: (i, j))
                      for _ in range(n_out))
    out_shape = tuple(jax.ShapeDtypeStruct((Mp, Np), x.dtype)
                      for _ in range(n_out))

    outs = pl.pallas_call(
        _make_linear_kernel(n_out),
        out_shape=out_shape,
        grid_spec=pltpu.PrefetchScalarGridSpec(
            num_scalar_prefetch=0,
            grid=grid,
            in_specs=in_specs,
            out_specs=out_specs,
            scratch_shapes=[pltpu.VMEM((tm, tn), jnp.float32)
                            for _ in range(n_out)],
        ),
        compiler_params=pltpu.CompilerParams(
            dimension_semantics=("parallel", "parallel", "arbitrary"),
            vmem_limit_bytes=_VMEM_LIMIT),
    )(xp, *wps, *bps)

    if not isinstance(outs, (list, tuple)):
        outs = (outs,)
    if Mp != M or Np != N:
        outs = tuple(o[:M, :N] for o in outs)
    return tuple(outs)


# ----------------------------------------------------------------------------
# Kernel 2: flash-style attention, one head per grid step on (B, H, L, D)
# ----------------------------------------------------------------------------
def _make_attn_kernel(scale):
    def kernel(q_ref, k_ref, v_ref, mask_ref, o_ref, m_scr, l_scr, acc_scr):
        # q: (1, 1, tq, D)  k/v: (1, 1, tk, D)  mask: (1, 1, tk) additive f32
        # o: (1, 1, tq, D)  scratch: m/l (tq, 1) f32, acc (tq, D) f32
        ki = pl.program_id(3)

        @pl.when(ki == 0)
        def _init():
            m_scr[...] = jnp.full_like(m_scr, -jnp.inf)
            l_scr[...] = jnp.zeros_like(l_scr)
            acc_scr[...] = jnp.zeros_like(acc_scr)

        # Fold 1/sqrt(D) into the small (tq, D) q tile, not the (tq, tk) logits.
        q = (q_ref[0, 0] * scale).astype(jnp.bfloat16)          # (tq, D)
        k = k_ref[0, 0].astype(jnp.bfloat16)                    # (tk, D)
        v = v_ref[0, 0].astype(jnp.bfloat16)                    # (tk, D)
        mask = mask_ref[0]                                      # (1, tk) f32

        # s[q, k] = sum_d q[q, d] * k[k, d]   (contract last dims; no K copy)
        s = lax.dot_general(
            q, k, dimension_numbers=(((1,), (1,)), ((), ())),
            preferred_element_type=jnp.float32)                 # (tq, tk) f32
        s = s + mask

        m_prev = m_scr[...]                                     # (tq, 1)
        m_new = jnp.maximum(m_prev, jnp.max(s, axis=-1, keepdims=True))
        alpha = jnp.exp(m_prev - m_new)
        p = jnp.exp(s - m_new)                                  # (tq, tk) f32

        l_scr[...] = alpha * l_scr[...] + jnp.sum(p, axis=-1, keepdims=True)
        acc_scr[...] = alpha * acc_scr[...] + lax.dot_general(
            p.astype(jnp.bfloat16), v,
            dimension_numbers=(((1,), (0,)), ((), ())),
            preferred_element_type=jnp.float32)                 # (tq, D)
        m_scr[...] = m_new

        @pl.when(ki == pl.num_programs(3) - 1)
        def _fin():
            # Finalize runs once per (b, h, q-tile): exact divide is fine here.
            o_ref[0, 0] = (acc_scr[...] / l_scr[...]).astype(o_ref.dtype)

    return kernel


def pallas_mha_attention(q, k, v, mask_add, *, tq=256, tk=512):
    """q:(B,H,Lq,D), k/v:(B,H,Lk,D), mask_add:(B,Lk) additive -> (B,H,Lq,D)."""
    B, H, Lq, D = q.shape
    Lk = k.shape[2]

    tq = _choose_tile(Lq, tq, 8)
    tk = _choose_tile(Lk, tk, 128)
    Lqp, Lkp = _round_up(Lq, tq), _round_up(Lk, tk)

    if Lqp != Lq:
        q = jnp.pad(q, ((0, 0), (0, 0), (0, Lqp - Lq), (0, 0)))
    if Lkp != Lk:
        k = jnp.pad(k, ((0, 0), (0, 0), (0, Lkp - Lk), (0, 0)))
        v = jnp.pad(v, ((0, 0), (0, 0), (0, Lkp - Lk), (0, 0)))
        # Padded key positions are masked out so they contribute zero weight.
        mask_add = jnp.pad(mask_add, ((0, 0), (0, Lkp - Lk)),
                           constant_values=_MASK_VALUE)
    mask3 = mask_add.reshape(B, 1, Lkp).astype(jnp.float32)

    grid = (B, H, Lqp // tq, Lkp // tk)   # kv (reduction) axis last

    # TODO(synk): when D == 64 two heads could be fused per grid step for a
    # 128-lane-dense output store; single-head blocks are kept for generality.
    out = pl.pallas_call(
        _make_attn_kernel(1.0 / math.sqrt(D)),
        out_shape=jax.ShapeDtypeStruct((B, H, Lqp, D), q.dtype),
        grid_spec=pltpu.PrefetchScalarGridSpec(
            num_scalar_prefetch=0,
            grid=grid,
            in_specs=[
                pl.BlockSpec((1, 1, tq, D), lambda b, h, qi, ki: (b, h, qi, 0)),
                pl.BlockSpec((1, 1, tk, D), lambda b, h, qi, ki: (b, h, ki, 0)),
                pl.BlockSpec((1, 1, tk, D), lambda b, h, qi, ki: (b, h, ki, 0)),
                pl.BlockSpec((1, 1, tk), lambda b, h, qi, ki: (b, 0, ki)),
            ],
            out_specs=pl.BlockSpec((1, 1, tq, D),
                                   lambda b, h, qi, ki: (b, h, qi, 0)),
            scratch_shapes=[
                pltpu.VMEM((tq, 1), jnp.float32),   # running max
                pltpu.VMEM((tq, 1), jnp.float32),   # running denominator
                pltpu.VMEM((tq, D), jnp.float32),   # running output
            ],
        ),
        compiler_params=pltpu.CompilerParams(
            dimension_semantics=("parallel", "parallel", "parallel",
                                 "arbitrary"),
            vmem_limit_bytes=_VMEM_LIMIT),
    )(q, k, v, mask3)

    if Lqp != Lq:
        out = out[:, :, :Lq, :]
    return out


# ----------------------------------------------------------------------------
# CrossAttention forward (glue in plain JAX, hot paths in Pallas)
# ----------------------------------------------------------------------------
def cross_attention_forward(query, key, value, params, num_heads,
                            key_padding_mask=None):
    B, Lq, E = query.shape
    _, Lk, _ = key.shape
    assert E % num_heads == 0
    H = num_heads
    D = E // H

    w_in = params["in_proj_weight"]    # (3E, E)  PyTorch layout
    b_in = params["in_proj_bias"]      # (3E,)
    w_out = params["out_proj_weight"]  # (E, E)
    b_out = params["out_proj_bias"]    # (E,)

    # One-time weight transposes to (K_in, N_out) so the projection kernel does
    # a plain x @ w (no per-grid-step RHS relayout on the MXU).
    wq_t, wk_t, wv_t = w_in[:E].T, w_in[E:2 * E].T, w_in[2 * E:].T
    bq, bk, bv = b_in[:E], b_in[E:2 * E], b_in[2 * E:]
    w_out_t = w_out.T

    xq = query.reshape(B * Lq, E)
    xk = key.reshape(B * Lk, E)
    xv = value.reshape(B * Lk, E)

    # Input projections; when activations alias, one fused kernel produces the
    # separate outputs directly (single HBM read of x, no wrapper-side slices).
    if (query is key) and (key is value):
        q2, k2, v2 = pallas_linear_fused(xq, (wq_t, wk_t, wv_t), (bq, bk, bv))
    elif key is value:
        (q2,) = pallas_linear_fused(xq, (wq_t,), (bq,))
        k2, v2 = pallas_linear_fused(xk, (wk_t, wv_t), (bk, bv))
    else:
        (q2,) = pallas_linear_fused(xq, (wq_t,), (bq,))
        (k2,) = pallas_linear_fused(xk, (wk_t,), (bk,))
        (v2,) = pallas_linear_fused(xv, (wv_t,), (bv,))

    # (B*L, E) -> (B, H, L, D): one transpose per tensor so every attention
    # grid step sees a contiguous, lane-dense (tile, D) head (no in-kernel
    # per-head sublane gather, no H-way unroll).
    q4 = q2.reshape(B, Lq, H, D).transpose(0, 2, 1, 3)
    k4 = k2.reshape(B, Lk, H, D).transpose(0, 2, 1, 3)
    v4 = v2.reshape(B, Lk, H, D).transpose(0, 2, 1, 3)

    # key_padding_mask: (B, Lk) bool, True = ignore this key (additive bias).
    if key_padding_mask is None:
        mask_add = jnp.zeros((B, Lk), jnp.float32)
    else:
        mask_add = jnp.where(key_padding_mask, _MASK_VALUE, 0.0).astype(
            jnp.float32)
    # TODO(synk): query rows whose keys are ALL padded produce a uniform
    # softmax over padding here; torch.nn.MultiheadAttention returns NaN.

    o4 = pallas_mha_attention(q4, k4, v4, mask_add)      # (B, H, Lq, D)
    o2 = o4.transpose(0, 2, 1, 3).reshape(B * Lq, E)     # concat heads

    (out,) = pallas_linear_fused(o2, (w_out_t,), (b_out,))
    return out.reshape(B, Lq, E)


# ----------------------------------------------------------------------------
# Pure-JAX reference (f32 math) for a sanity check
# ----------------------------------------------------------------------------
def cross_attention_reference(query, key, value, params, num_heads,
                              key_padding_mask=None):
    B, Lq, E = query.shape
    _, Lk, _ = key.shape
    D = E // num_heads
    w_in, b_in = params["in_proj_weight"], params["in_proj_bias"]
    wq, wk, wv = w_in[:E], w_in[E:2 * E], w_in[2 * E:]
    bq, bk, bv = b_in[:E], b_in[E:2 * E], b_in[2 * E:]
    q = (query @ wq.T + bq).reshape(B, Lq, num_heads, D).transpose(0, 2, 1, 3)
    k = (key @ wk.T + bk).reshape(B, Lk, num_heads, D).transpose(0, 2, 1, 3)
    v = (value @ wv.T + bv).reshape(B, Lk, num_heads, D).transpose(0, 2, 1, 3)
    s = jnp.einsum("bhqd,bhkd->bhqk", q, k) / math.sqrt(D)
    if key_padding_mask is not None:
        s = s + jnp.where(key_padding_mask, _MASK_VALUE, 0.0)[:, None, None, :]
    p = jax.nn.softmax(s, axis=-1)
    o = jnp.einsum("bhqk,bhkd->bhqd", p, v)
    o = o.transpose(0, 2, 1, 3).reshape(B, Lq, E)
    return o @ params["out_proj_weight"].T + params["out_proj_bias"]


if __name__ == "__main__":
    B, Lq, Lk = 2, 8, 12
    E, H = 32, 4

    root = jax.random.PRNGKey(0)
    k1, k2, k3, k4, k5, k6, k7 = jax.random.split(root, 7)

    # Deterministic parameter init (shapes match nn.MultiheadAttention).
    params = {
        "in_proj_weight": 0.05 * jax.random.normal(k1, (3 * E, E), jnp.float32),
        "in_proj_bias": 0.05 * jax.random.normal(k2, (3 * E,), jnp.float32),
        "out_proj_weight": 0.05 * jax.random.normal(k3, (E, E), jnp.float32),
        "out_proj_bias": 0.05 * jax.random.normal(k4, (E,), jnp.float32),
    }

    query = jax.random.normal(k5, (B, Lq, E), jnp.float32)
    key_ = jax.random.normal(k6, (B, Lk, E), jnp.float32)
    value = jax.random.normal(k7, (B, Lk, E), jnp.float32)

    # key_padding_mask: True = ignore this key (last 3 keys of batch 1 padded)
    key_padding_mask = jnp.zeros((B, Lk), jnp.bool_).at[1, Lk - 3:].set(True)

    out = cross_attention_forward(query, key_, value, params, H,
                                  key_padding_mask=key_padding_mask)
    out = jax.block_until_ready(out)

    ref = cross_attention_reference(query, key_, value, params, H,
                                    key_padding_mask=key_padding_mask)
    # Tolerance accounts for bf16 MXU operands (f32 accumulation) in the
    # projection and attention kernels.
    np.testing.assert_allclose(np.asarray(out), np.asarray(ref),
                               rtol=2e-2, atol=2e-2)
    assert out.shape == (B, Lq, E)

    print("KERNEL_OK")
</pallas_src>

<mosaic_0001>
module attributes {stable_mosaic.version = 11 : i64} {
  func.func @kernel(%arg0: i32, %arg1: i32, %arg2: i32, %arg3: memref<16x128xf32, #tpu.memory_space<vmem>>, %arg4: memref<128x128xf32, #tpu.memory_space<vmem>>, %arg5: memref<1x128xf32, #tpu.memory_space<vmem>>, %arg6: memref<16x128xf32, #tpu.memory_space<vmem>>, %arg7: memref<16x128xf32, #tpu.memory_space<vmem>>) attributes {dimension_semantics = [#tpu.dimension_semantics<parallel>, #tpu.dimension_semantics<parallel>, #tpu.dimension_semantics<arbitrary>], iteration_bounds = array<i64: 1, 1, 1>, scalar_prefetch = 0 : i64, scratch_operands = 1 : i64, tpu.core_type = #tpu.core_type<tc>, window_params = [{transform_indices = @transform_0, window_bounds = array<i64: 16, 128>}, {transform_indices = @transform_1, window_bounds = array<i64: 128, 128>}, {transform_indices = @transform_2, window_bounds = array<i64: 1, 128>}, {transform_indices = @transform_3, window_bounds = array<i64: 16, 128>}]} {
    %c0 = arith.constant 0 : index
    %c0_0 = arith.constant 0 : index
    %0 = vector.load %arg3[%c0, %c0_0] : memref<16x128xf32, #tpu.memory_space<vmem>>, vector<16x128xf32>
    %1 = arith.truncf %0 : vector<16x128xf32> to vector<16x128xbf16>
    %c0_i32 = arith.constant 0 : i32
    %2 = arith.cmpi eq, %arg2, %c0_i32 : i32
    %3 = arith.extui %2 : i1 to i32
    %c0_i32_1 = arith.constant 0 : i32
    %4 = arith.cmpi ne, %3, %c0_i32_1 : i32
    scf.if %4 {
      %c0_10 = arith.constant 0 : index
      %c0_11 = arith.constant 0 : index
      %14 = vector.load %arg5[%c0_10, %c0_11] : memref<1x128xf32, #tpu.memory_space<vmem>>, vector<1x128xf32>
      %15 = vector.shape_cast %14 : vector<1x128xf32> to vector<1x128xf32>
      %16 = vector.broadcast %15 : vector<1x128xf32> to vector<16x128xf32>
      %c0_12 = arith.constant 0 : index
      %c0_13 = arith.constant 0 : index
      %17 = vector.load %arg7[%c0_12, %c0_13] : memref<16x128xf32, #tpu.memory_space<vmem>>, vector<16x128xf32>
      tpu.vector_store %arg7[%c0_12, %c0_13], %16 {strides = array<i32>} : memref<16x128xf32, #tpu.memory_space<vmem>>, vector<16x128xf32>,
    } else {
    }
    %c0_2 = arith.constant 0 : index
    %c0_3 = arith.constant 0 : index
    %5 = vector.load %arg7[%c0_2, %c0_3] : memref<16x128xf32, #tpu.memory_space<vmem>>, vector<16x128xf32>
    %c0_4 = arith.constant 0 : index
    %c0_5 = arith.constant 0 : index
    %6 = vector.load %arg4[%c0_4, %c0_5] : memref<128x128xf32, #tpu.memory_space<vmem>>, vector<128x128xf32>
    %7 = arith.truncf %6 : vector<128x128xf32> to vector<128x128xbf16>
    %cst = arith.constant dense<0.000000e+00> : vector<16x128xf32>
    %8 = tpu.matmul %1, %7, %cst {dimension_numbers = #tpu.dot_dimension_numbers<[1], [0], [0], [1], [0, 0, 1, 1], [], []>} : vector<16x128xbf16>, vector<128x128xbf16>, vector<16x128xf32> -> vector<16x128xf32>
    %9 = arith.addf %5, %8 : vector<16x128xf32>
    %c0_6 = arith.constant 0 : index
    %c0_7 = arith.constant 0 : index
    %10 = vector.load %arg7[%c0_6, %c0_7] : memref<16x128xf32, #tpu.memory_space<vmem>>, vector<16x128xf32>
    tpu.vector_store %arg7[%c0_6, %c0_7], %9 {strides = array<i32>} : memref<16x128xf32, #tpu.memory_space<vmem>>, vector<16x128xf32>,
    %c0_i32_8 = arith.constant 0 : i32
    %11 = arith.cmpi eq, %arg2, %c0_i32_8 : i32
    %12 = arith.extui %11 : i1 to i32
    %c0_i32_9 = arith.constant 0 : i32
    %13 = arith.cmpi ne, %12, %c0_i32_9 : i32
    scf.if %13 {
      %c0_10 = arith.constant 0 : index
      %c0_11 = arith.constant 0 : index
      %14 = vector.load %arg7[%c0_10, %c0_11] : memref<16x128xf32, #tpu.memory_space<vmem>>, vector<16x128xf32>
      %c0_12 = arith.constant 0 : index
      %c0_13 = arith.constant 0 : index
      %15 = vector.load %arg6[%c0_12, %c0_13] : memref<16x128xf32, #tpu.memory_space<vmem>>, vector<16x128xf32>
      tpu.vector_store %arg6[%c0_12, %c0_13], %14 {strides = array<i32>} : memref<16x128xf32, #tpu.memory_space<vmem>>, vector<16x128xf32>,
    } else {
    }
    return
  }
  func.func @transform_0(%arg0: i32, %arg1: i32, %arg2: i32) -> (i32, i32) {
    %c0_i32 = arith.constant 0 : i32
    return %arg0, %arg2 : i32, i32
  }
  func.func @transform_1(%arg0: i32, %arg1: i32, %arg2: i32) -> (i32, i32) {
    %c0_i32 = arith.constant 0 : i32
    return %arg2, %arg1 : i32, i32
  }
  func.func @transform_2(%arg0: i32, %arg1: i32, %arg2: i32) -> (i32, i32) {
    %c0_i32 = arith.constant 0 : i32
    %c0_i32_0 = arith.constant 0 : i32
    return %c0_i32, %arg1 : i32, i32
  }
  func.func @transform_3(%arg0: i32, %arg1: i32, %arg2: i32) -> (i32, i32) {
    %c0_i32 = arith.constant 0 : i32
    return %arg0, %arg1 : i32, i32
  }
}

</mosaic_0001>

<bundles_post_ra>
// kernel: tpu_custom_call.1
= control target key start
LH: loop header
LB: loop body
LE: loop exit
PB: predicated region body
PF: predicated region fallthrough
CT: control target
= control target key end

     0   :  { %8 = vsyncpa [#allocation4], 0  ;;  %s261_s0 = inlined_call_operand.hbm [shape: f32[16,128], index: 0, kind: input, shape index: {}]   ;;  %s262_s1 = inlined_call_operand.hbm [shape: f32[128,128], index: 1, kind: input, shape index: {}]   ;;  %s263_s2 = inlined_call_operand.vmem [shape: f32[1,128], index: 2, kind: input, shape index: {}]   ;;  %s264_s3 = inlined_call_operand.hbm [shape: f32[16,128], index: 3, kind: output, shape index: {}]  }
   0x1   :  { %9 = vsyncpa [#allocation7], 0 }
   0x2   :  { %10 = vsyncpa [#allocation5], 0  ;;  %s15_s14 = sshll.u32 %s261_s0, 4  ;;  %s215_s15 = smov [#allocation3]   ;;  %s16_s14 = int_to_ptr.hbm [resolvable:$true] %s15_s14 }
   0x3   :  { %s17_s16 = sshll.u32 %s215_s15, 4  ;;  %s28_s19 = sshll.u32 %s262_s1, 4  ;;  %s18_s16 = int_to_ptr.vmem [resolvable:$true] %s17_s16  ;;  %s29_s19 = int_to_ptr.hbm [resolvable:$true] %s28_s19 }
   0x4   :  { %s216_s20 = smov 128   ;;  %s217_s21 = smov 8  }
   0x5   :  { %23 = dma.hbm_to_vmem [thread:$0]  %s16_s14, 256, %s18_s16, [#allocation4], %s216_s20, %s216_s20, %s217_s21  }
   0x6   :  { %s218_s22 = smov [#allocation6]  }
   0x7   :  { %s30_s23 = sshll.u32 %s218_s22, 4  ;;  %s31_s23 = int_to_ptr.vmem [resolvable:$true] %s30_s23 }
   0x8   :  { %36 = dma.hbm_to_vmem [thread:$0]  %s29_s19, 2048, %s31_s23, [#allocation7], %s216_s20, %s216_s20, %s217_s21  }
   0x9   :  { %209 = dma.done.wait [#allocation4], 256  }
   0xa   :  { %210 = vsyncadd [#allocation4], 4294967040 }
   0xb   :  { %211 = dma.done.wait [#allocation7], 2048  }
   0xc   :  { %212 = vsyncadd [#allocation7], 4294965248  ;;  %v76_v0 = vld [vmem:[#allocation6 + $0x70] sm:$0xff]  ;;  %v77_v1 = vld [vmem:[#allocation6 + $0x78] sm:$0xff]  ;;  %s219_s24 = smov [#allocation8]   ;;  %s117_s28 = sshll.u32 %s264_s3, 4  ;;  %s118_s28 = int_to_ptr.hbm [resolvable:$true] %s117_s28 }
   0xd   :  { %v74_v2 = vld [vmem:[#allocation6 + $0x60] sm:$0xff]  ;;  %v85_v3 = vpack.c.bf16 %v77_v1, %v76_v0  ;;  %v75_v4 = vld [vmem:[#allocation6 + $0x68] sm:$0xff]  ;;  %v72_v6 = vld [vmem:[#allocation6 + $0x50] sm:$0xff]  ;;  %s115_s25 = sshll.u32 %s219_s24, 4  ;;  %s116_s25 = int_to_ptr.vmem [resolvable:$true] %s115_s25 }
   0xe   :  { %v84_v5 = vpack.c.bf16 %v75_v4, %v74_v2  ;;  %v73_v7 = vld [vmem:[#allocation6 + $0x58] sm:$0xff]  ;;  %v70_v9 = vld [vmem:[#allocation6 + $0x40] sm:$0xff]  ;;  %v71_v10 = vld [vmem:[#allocation6 + $0x48] sm:$0xff] }
   0xf   :  { %86 = vmatpush.bf16.msra.mxu0 %v85_v3  ;;  %v83_v8 = vpack.c.bf16 %v73_v7, %v72_v6  ;;  %v82_v11 = vpack.c.bf16 %v71_v10, %v70_v9  ;;  %v68_v12 = vld [vmem:[#allocation6 + $0x30] sm:$0xff]  ;;  %v69_v13 = vld [vmem:[#allocation6 + $0x38] sm:$0xff]  ;;  %v66_v15 = vld [vmem:[#allocation6 + $0x20] sm:$0xff] }
  0x10   :  { %v81_v14 = vpack.c.bf16 %v69_v13, %v68_v12  ;;  %v67_v16 = vld [vmem:[#allocation6 + $0x28] sm:$0xff]  ;;  %v64_v18 = vld [vmem:[#allocation6 + $0x10] sm:$0xff]  ;;  %v65_v19 = vld [vmem:[#allocation6 + $0x18] sm:$0xff] }
  0x11   :  { %v80_v17 = vpack.c.bf16 %v67_v16, %v66_v15  ;;  %v79_v20 = vpack.c.bf16 %v65_v19, %v64_v18  ;;  %v62_v21 = vld [vmem:[#allocation6] sm:$0xff]  ;;  %v63_v22 = vld [vmem:[#allocation6 + $0x8] sm:$0xff]  ;;  %v47_v24 = vld [vmem:[#allocation3] sm:$0xff] }
  0x12   :  { %v78_v23 = vpack.c.bf16 %v63_v22, %v62_v21  ;;  %v48_v25 = vld [vmem:[#allocation3 + $0x8] sm:$0xff]  ;;  %v136_v27 = vld [vmem:[%s263_s2] ss:$0 sm:$0xff] }
  0x13   :  { %87 = vmatpush.bf16.msra.mxu0 %v84_v5  ;;  %v49_v26 = vpack.c.bf16 %v48_v25, %v47_v24 }
  0x17   :  { %88 = vmatpush.bf16.msra.mxu0 %v83_v8 }
  0x1b   :  { %89 = vmatpush.bf16.msra.mxu0 %v82_v11 }
  0x1f   :  { %90 = vmatpush.bf16.msra.mxu0 %v81_v14 }
  0x23   :  { %91 = vmatpush.bf16.msra.mxu0 %v80_v17 }
  0x27   :  { %92 = vmatpush.bf16.msra.mxu0 %v79_v20 }
  0x2b   :  { %93 = vmatpush.bf16.msra.mxu0 %v78_v23 }
  0x2e   :  { %94 = vmatmul.bf16.vlgmr.msra.gmra.mxu0 %v49_v26 }
  0xab   :  { %v95_v28 = vpop.f32.mrf.mxu0 }
  0xac   :  { %v100_v29 = vadd.f32 %v136_v27, %v95_v28 }
  0xae   :  { %109 = vst [vmem:[#allocation8] sm:$0xff] %v100_v29 }
  0xb3   :  { %v97_v30 = vpop.f32.mrf.mxu0 }
  0xb4   :  { %v101_v31 = vadd.f32 %v136_v27, %v97_v30 }
  0xb6   :  { %110 = vst [vmem:[#allocation8 + $0x8] sm:$0xff] %v101_v31 }
  0xb7   :  { %123 = dma.vmem_to_hbm [thread:$0]  %s116_s25, 256, %s118_s28, [#allocation5], %s216_s20, %s216_s20, %s217_s21  }
  0xb8   :  { %213 = dma.done.wait [#allocation5], 256  }
  0xb9   :  { %214 = vsyncadd [#allocation5], 4294967040 }
  0xba   :  { %128 = vsyncpa [#allocation4], 1 }
  0xbb   :  { %129 = vsyncpa [#allocation7], 1 }
  0xbc   :  { %130 = vsyncpa [#allocation5], 1 }

</bundles_post_ra>
